<compile_context>
chip_gen: v6e
topology: v6e:2x2x1
jax: 0.10.0
libtpu: 0.0.40
codegen_flags: <defaults>
</compile_context>

<pallas_src>
import functools
import math

import jax
import jax.numpy as jnp
from jax import lax
from jax.experimental import pallas as pl
from jax.experimental.pallas import tpu as pltpu

EPS = 1e-6
_MAX_TR = 4096          # rows per tile cap
_MAX_TK = 2048          # lanes per tile cap (multiple of 128)
_LANES = 128


def _round_up(x, m):
    return -(-x // m) * m


def _vmem_budgets():
    """(input double-buffer budget, scoped-VMEM limit), derived from the chip."""
    try:
        cap = int(pltpu.get_tpu_info().vmem_capacity_bytes)
    except Exception:
        cap = 64 * 1024 * 1024  # conservative: v7x per-TensorCore VMEM
    input_budget = min(12 * 1024 * 1024, cap // 6)
    vmem_limit = min(40 * 1024 * 1024, (cap * 5) // 8)
    return int(input_budget), int(vmem_limit)


def _choose_lane_tile(HW):
    """Returns (TK, HW_pad, needs_mask); TK is always a multiple of 128."""
    if HW % _LANES == 0:
        if HW <= _MAX_TK:
            return HW, HW, False
        for cand in range(_MAX_TK, _LANES - 1, -_LANES):
            if HW % cand == 0:
                return cand, HW, False
    # Ragged HW: pad lanes up to a multiple of TK, mask the tail in-kernel.
    hw128 = _round_up(HW, _LANES)
    candidates = [c for c in (2048, 1024, 512, 256, 128) if c <= hw128]
    tk = min(candidates, key=lambda c: (_round_up(HW, c) - HW, -c))
    return tk, _round_up(HW, tk), True


def _choose_row_tiling(R, TK, itemsize, input_budget):
    """Returns (TR, n_row_tiles).  TR is a multiple of 8; the tile count is
    kept even when R allows so the 'parallel' row axis balances across both
    v7x TensorCores (free on v5e/v6e)."""
    r_up8 = _round_up(R, 8)
    tr_budget = max(8, min(_MAX_TR, (input_budget // (2 * itemsize * TK)) // 8 * 8))
    if r_up8 <= tr_budget:
        if r_up8 >= 32:
            n_tiles = 4
        elif r_up8 >= 16:
            n_tiles = 2
        else:
            n_tiles = 1
    else:
        n_tiles = -(-r_up8 // tr_budget)
        if n_tiles % 2:
            n_tiles += 1
    tr = _round_up(-(-r_up8 // n_tiles), 8)
    return tr, n_tiles


# ----------------------------- pow helpers ---------------------------------

def _int_pow(x, n):
    out = x
    for _ in range(n - 1):
        out = out * x
    return out


def _pow_static(x, p):
    """x ** p for strictly positive x and a compile-time exponent p.
    Integer / half-integer p avoid the EUP log+exp pair entirely."""
    ip = int(math.floor(p))
    frac = p - ip
    if 1 <= ip <= 6 and abs(frac) < 1e-12:
        return _int_pow(x, ip)
    if 0 <= ip <= 6 and abs(frac - 0.5) < 1e-12:
        r = jnp.sqrt(x)
        return r if ip == 0 else _int_pow(x, ip) * r
    # TODO(synk): on v6e/v7x bf16 log/exp would ~double EUP throughput but
    # relaxes f32 parity with the PyTorch reference (and v5e has no bf16 EUP).
    return jnp.exp(jnp.float32(p) * jnp.log(x))


def _root_static(m, p):
    if abs(p - 1.0) < 1e-12:
        return m
    if abs(p - 2.0) < 1e-12:
        return jnp.sqrt(m)
    return jnp.exp(jnp.log(m) * jnp.float32(1.0 / p))


# ------------------------------- kernels ------------------------------------

def _accumulate(x_ref, acc_ref, pow_fn, *, k, eps, tk, hw, needs_mask):
    """Add x^p for this (TR, TK) tile into the lane-wide (TR, 128) accumulator.
    Pure VALU adds per 128-lane chunk; no cross-lane reduce in the hot loop."""
    tr = acc_ref.shape[0]
    if needs_mask:
        lane = lax.broadcasted_iota(jnp.int32, (tr, _LANES), 1)  # hoisted
        base = k * tk
    for c in range(tk // _LANES):
        xs = x_ref[:, c * _LANES:(c + 1) * _LANES].astype(jnp.float32)
        xp = pow_fn(jnp.maximum(xs, eps))
        if needs_mask:
            xp = jnp.where(base + c * _LANES + lane < hw, xp, 0.0)
        acc_ref[...] += xp


def _finalize(o_ref, acc_ref, root_fn, *, hw):
    row_sum = jnp.sum(acc_ref[...], axis=-1, keepdims=True)  # one XLU reduce / tile
    m = row_sum * (1.0 / hw)                                  # mean over the *true* H*W
    o_ref[...] = root_fn(m).astype(o_ref.dtype)


def _gem_kernel_static(x_ref, o_ref, acc_ref, *, p, hw, eps, tk, needs_mask):
    k = pl.program_id(1)

    @pl.when(k == 0)
    def _init():
        acc_ref[...] = jnp.zeros_like(acc_ref)

    _accumulate(x_ref, acc_ref, lambda v: _pow_static(v, p),
                k=k, eps=eps, tk=tk, hw=hw, needs_mask=needs_mask)

    @pl.when(k == pl.num_programs(1) - 1)
    def _fin():
        _finalize(o_ref, acc_ref, lambda m: _root_static(m, p), hw=hw)


def _gem_kernel_traced(p_ref, x_ref, o_ref, acc_ref, *, hw, eps, tk, needs_mask):
    k = pl.program_id(1)

    @pl.when(k == 0)
    def _init():
        acc_ref[...] = jnp.zeros_like(acc_ref)

    p = p_ref[0]
    _accumulate(x_ref, acc_ref, lambda v: jnp.exp(p * jnp.log(v)),
                k=k, eps=eps, tk=tk, hw=hw, needs_mask=needs_mask)

    @pl.when(k == pl.num_programs(1) - 1)
    def _fin():
        inv_p = 1.0 / p
        _finalize(o_ref, acc_ref, lambda m: jnp.exp(jnp.log(m) * inv_p), hw=hw)


# ------------------------------- wrapper -------------------------------------

def _static_p_value(p):
    """float(p) when p is a compile-time constant, else None (traced)."""
    try:
        return float(jnp.asarray(p).reshape(()))
    except Exception:
        return None


def gem_pool(x, p, *, eps=EPS):
    """GeM pooling.  x: (N, C, H, W), p: scalar -> (N, C, 1, 1) in x.dtype."""
    N, C, H, W = x.shape
    R, HW = N * C, H * W
    # Keep the producer's dtype in HBM (bf16 input halves read bytes); the
    # kernel upcasts to f32 just before the clamp/pow.
    x2 = x.reshape(R, HW)
    # TODO(synk): for small ragged HW (7x7/14x14) with an NHWC producer, a
    # channels-on-lanes (N*HW, C) layout would give full lane occupancy and
    # unmasked output stores; not implemented for NCHW input.

    input_budget, vmem_limit = _vmem_budgets()
    TK, HW_pad, needs_mask = _choose_lane_tile(HW)
    itemsize = jnp.dtype(x.dtype).itemsize
    TR, n_row_tiles = _choose_row_tiling(R, TK, itemsize, input_budget)
    R_pad = TR * n_row_tiles

    if R_pad != R or HW_pad != HW:
        # Benign positive padding: pad lanes are masked in-kernel, pad rows
        # are computed (on value 1.0) and then discarded.
        x2 = jnp.pad(x2, ((0, R_pad - R), (0, HW_pad - HW)), constant_values=1.0)

    grid = (n_row_tiles, HW_pad // TK)
    compiler_params = pltpu.CompilerParams(
        dimension_semantics=("parallel", "arbitrary"),
        vmem_limit_bytes=vmem_limit,
    )
    out_shape = jax.ShapeDtypeStruct((R_pad, 1), x.dtype)
    scratch = [pltpu.VMEM((TR, _LANES), jnp.float32)]  # lane-wide row accumulator

    p_static = _static_p_value(p)
    if p_static is not None:
        if p_static == 0.0:
            raise ValueError("GeM requires p != 0.")
        kernel = functools.partial(_gem_kernel_static, p=p_static, hw=HW,
                                   eps=float(eps), tk=TK, needs_mask=needs_mask)
        out = pl.pallas_call(
            kernel,
            out_shape=out_shape,
            grid_spec=pltpu.PrefetchScalarGridSpec(
                num_scalar_prefetch=0,
                grid=grid,
                in_specs=[pl.BlockSpec((TR, TK), lambda i, k: (i, k))],
                out_specs=pl.BlockSpec((TR, 1), lambda i, k: (i, 0)),
                scratch_shapes=scratch,
            ),
            compiler_params=compiler_params,
        )(x2)
    else:
        kernel = functools.partial(_gem_kernel_traced, hw=HW, eps=float(eps),
                                   tk=TK, needs_mask=needs_mask)
        p_arr = jnp.asarray(p, jnp.float32).reshape(1)
        out = pl.pallas_call(
            kernel,
            out_shape=out_shape,
            grid_spec=pltpu.PrefetchScalarGridSpec(
                num_scalar_prefetch=1,  # p (learnable scalar) lands in SMEM
                grid=grid,
                in_specs=[pl.BlockSpec((TR, TK), lambda i, k, p_ref: (i, k))],
                out_specs=pl.BlockSpec((TR, 1), lambda i, k, p_ref: (i, 0)),
                scratch_shapes=scratch,
            ),
            compiler_params=compiler_params,
        )(p_arr, x2)

    return out[:R].reshape(N, C, 1, 1)


def gem_reference(x, p, eps=EPS):
    xc = jnp.maximum(x, eps)
    return jnp.mean(xc ** p, axis=(-2, -1), keepdims=True) ** (1.0 / p)


if __name__ == "__main__":
    key = jax.random.PRNGKey(0)
    N, C, H, W = 2, 4, 16, 16
    x = jax.random.uniform(key, (N, C, H, W), dtype=jnp.float32,
                           minval=0.0, maxval=2.0)

    # Deterministic parameter init, matching nn.Parameter(torch.ones(1) * 2.5)
    p = jnp.float32(2.5)

    y_ref = gem_reference(x, p)

    # Static-p fast path (inference: p is a concrete constant).
    y = gem_pool(x, p)
    jax.block_until_ready(y)
    assert y.shape == (N, C, 1, 1)
    assert jnp.allclose(y, y_ref, rtol=1e-5, atol=1e-5), (y, y_ref)

    # Traced-p path (p is a learnable parameter under jit) via scalar prefetch.
    y2 = jax.jit(gem_pool)(x, p)
    jax.block_until_ready(y2)
    assert jnp.allclose(y2, y_ref, rtol=1e-5, atol=1e-5), (y2, y_ref)

    print("KERNEL_OK")
</pallas_src>

<mosaic_0001>
module attributes {stable_mosaic.version = 11 : i64} {
  func.func @_gem_kernel_static(%arg0: i32, %arg1: i32, %arg2: memref<8x256xf32, #tpu.memory_space<vmem>>, %arg3: memref<8x1xf32, #tpu.memory_space<vmem>>, %arg4: memref<8x128xf32, #tpu.memory_space<vmem>>) attributes {dimension_semantics = [#tpu.dimension_semantics<parallel>, #tpu.dimension_semantics<arbitrary>], iteration_bounds = array<i64: 1, 1>, scalar_prefetch = 0 : i64, scratch_operands = 1 : i64, tpu.core_type = #tpu.core_type<tc>, window_params = [{transform_indices = @transform_0, window_bounds = array<i64: 8, 256>}, {transform_indices = @transform_1, window_bounds = array<i64: 8, 1>}]} {
    %c0_i32 = arith.constant 0 : i32
    %0 = arith.cmpi eq, %arg1, %c0_i32 : i32
    %1 = arith.extui %0 : i1 to i32
    %c0_i32_0 = arith.constant 0 : i32
    %2 = arith.cmpi ne, %1, %c0_i32_0 : i32
    scf.if %2 {
      %cst_14 = arith.constant 0.000000e+00 : f32
      %24 = vector.broadcast %cst_14 : f32 to vector<8x128xf32>
      %c0_15 = arith.constant 0 : index
      %c0_16 = arith.constant 0 : index
      %25 = vector.load %arg4[%c0_15, %c0_16] : memref<8x128xf32, #tpu.memory_space<vmem>>, vector<8x128xf32>
      tpu.vector_store %arg4[%c0_15, %c0_16], %24 {strides = array<i32>} : memref<8x128xf32, #tpu.memory_space<vmem>>, vector<8x128xf32>,
    } else {
    }
    %c0 = arith.constant 0 : index
    %c0_1 = arith.constant 0 : index
    %3 = vector.load %arg2[%c0, %c0_1] : memref<8x256xf32, #tpu.memory_space<vmem>>, vector<8x128xf32>
    %cst = arith.constant 9.99999997E-7 : f32
    %4 = vector.broadcast %cst : f32 to vector<8x128xf32>
    %5 = arith.maximumf %3, %4 : vector<8x128xf32>
    %6 = math.sqrt %5 : vector<8x128xf32>
    %7 = arith.mulf %5, %5 : vector<8x128xf32>
    %8 = arith.mulf %7, %6 : vector<8x128xf32>
    %c0_2 = arith.constant 0 : index
    %c0_3 = arith.constant 0 : index
    %9 = vector.load %arg4[%c0_2, %c0_3] : memref<8x128xf32, #tpu.memory_space<vmem>>, vector<8x128xf32>
    %10 = arith.addf %9, %8 : vector<8x128xf32>
    %c0_4 = arith.constant 0 : index
    %c0_5 = arith.constant 0 : index
    %11 = vector.load %arg4[%c0_4, %c0_5] : memref<8x128xf32, #tpu.memory_space<vmem>>, vector<8x128xf32>
    tpu.vector_store %arg4[%c0_4, %c0_5], %10 {strides = array<i32>} : memref<8x128xf32, #tpu.memory_space<vmem>>, vector<8x128xf32>,
    %c0_6 = arith.constant 0 : index
    %c128 = arith.constant 128 : index
    %12 = vector.load %arg2[%c0_6, %c128] : memref<8x256xf32, #tpu.memory_space<vmem>>, vector<8x128xf32>
    %cst_7 = arith.constant 9.99999997E-7 : f32
    %13 = vector.broadcast %cst_7 : f32 to vector<8x128xf32>
    %14 = arith.maximumf %12, %13 : vector<8x128xf32>
    %15 = math.sqrt %14 : vector<8x128xf32>
    %16 = arith.mulf %14, %14 : vector<8x128xf32>
    %17 = arith.mulf %16, %15 : vector<8x128xf32>
    %c0_8 = arith.constant 0 : index
    %c0_9 = arith.constant 0 : index
    %18 = vector.load %arg4[%c0_8, %c0_9] : memref<8x128xf32, #tpu.memory_space<vmem>>, vector<8x128xf32>
    %19 = arith.addf %18, %17 : vector<8x128xf32>
    %c0_10 = arith.constant 0 : index
    %c0_11 = arith.constant 0 : index
    %20 = vector.load %arg4[%c0_10, %c0_11] : memref<8x128xf32, #tpu.memory_space<vmem>>, vector<8x128xf32>
    tpu.vector_store %arg4[%c0_10, %c0_11], %19 {strides = array<i32>} : memref<8x128xf32, #tpu.memory_space<vmem>>, vector<8x128xf32>,
    %c0_i32_12 = arith.constant 0 : i32
    %21 = arith.cmpi eq, %arg1, %c0_i32_12 : i32
    %22 = arith.extui %21 : i1 to i32
    %c0_i32_13 = arith.constant 0 : i32
    %23 = arith.cmpi ne, %22, %c0_i32_13 : i32
    scf.if %23 {
      %c0_14 = arith.constant 0 : index
      %c0_15 = arith.constant 0 : index
      %24 = vector.load %arg4[%c0_14, %c0_15] : memref<8x128xf32, #tpu.memory_space<vmem>>, vector<8x128xf32>
      %cst_16 = arith.constant dense<0.000000e+00> : vector<8xf32>
      %25 = vector.multi_reduction <add>, %24, %cst_16 [1] : vector<8x128xf32> to vector<8xf32>
      %26 = vector.shape_cast %25 : vector<8xf32> to vector<8x1xf32>
      %cst_17 = arith.constant 3.906250e-03 : f32
      %27 = vector.broadcast %cst_17 : f32 to vector<8x1xf32>
      %28 = arith.mulf %26, %27 : vector<8x1xf32>
      %29 = math.log %28 : vector<8x1xf32>
      %cst_18 = arith.constant 4.000000e-01 : f32
      %30 = vector.broadcast %cst_18 : f32 to vector<8x1xf32>
      %31 = arith.mulf %29, %30 : vector<8x1xf32>
      %32 = math.exp %31 : vector<8x1xf32>
      %c0_19 = arith.constant 0 : index
      %c0_20 = arith.constant 0 : index
      %33 = vector.load %arg3[%c0_19, %c0_20] : memref<8x1xf32, #tpu.memory_space<vmem>>, vector<8x1xf32>
      tpu.vector_store %arg3[%c0_19, %c0_20], %32 {strides = array<i32>} : memref<8x1xf32, #tpu.memory_space<vmem>>, vector<8x1xf32>,
    } else {
    }
    return
  }
  func.func @transform_0(%arg0: i32, %arg1: i32) -> (i32, i32) {
    %c0_i32 = arith.constant 0 : i32
    return %arg0, %arg1 : i32, i32
  }
  func.func @transform_1(%arg0: i32, %arg1: i32) -> (i32, i32) {
    %c0_i32 = arith.constant 0 : i32
    %c0_i32_0 = arith.constant 0 : i32
    return %arg0, %c0_i32 : i32, i32
  }
}

</mosaic_0001>

<bundles_post_ra>
// kernel: tpu_custom_call.1
= control target key start
LH: loop header
LB: loop body
LE: loop exit
PB: predicated region body
PF: predicated region fallthrough
CT: control target
= control target key end

     0   :  { %6 = vsyncpa [#allocation4], 0  ;;  %s103_s6 = smov [#allocation3]   ;;  %s120_s0 = inlined_call_operand.hbm [shape: f32[8,256], index: 0, kind: input, shape index: {}]   ;;  %s121_s1 = inlined_call_operand.vmem [shape: f32[8,1], index: 1, kind: output, shape index: {}]  }
   0x1   :  { %s13_s7 = sshll.u32 %s103_s6, 4  ;;  %s14_s7 = int_to_ptr.vmem [resolvable:$true] %s13_s7 }
   0x2   :  { %s89_s8 = scalar_lea.vmem %s14_s7, 256  ;;  %p94_p1 = scmp.lt.s32.totalorder %s14_s7, %s14_s7 }
   0x3   :  { %p90_p0 = scmp.ne.s32.totalorder %s14_s7, %s89_s8  ;;  %p95_p2 = scmp.lt.s32.totalorder %s89_s8, %s89_s8 }
   0x5   :  { %p96_p3 = por %p95_p2, %p94_p1 }
   0x7   :  { %p97_p4 = pnand %p96_p3, %p90_p0 }
   0x9   :  { %100 = shalt.err (!%p97_p4)
}
   0xa   :  { %16 = dma.hbm_to_vmem [thread:$0]  %s120_s0, 256, %s14_s7, [#allocation4]  }
   0xb   :  { %101 = dma.done.wait [#allocation4], 256  }
   0xc   :  { %102 = vsyncadd [#allocation4], 4294967040  ;;  %v25_v0 = vld [vmem:[#allocation3] sm:$0xff]  ;;  %v39_v1 = vld [vmem:[#allocation3 + $0x8] sm:$0xff]  ;;  %vm65_vm4 = vcmask 7168  }
   0xd   :  { %v26_v2 = vmax.f32 %v25_v0, 1e-06  ;;  %v40_v3 = vmax.f32 %v39_v1, 1e-06 }
   0xf   :  { %73 = vrsqrt.f32 %v26_v2  ;;  %vm29_vm0 = vcmp.eq.f32.partialorder %v26_v2, inf  ;;  %vm31_vm1 = vcmp.eq.f32.partialorder %v26_v2, 0.0  ;;  %v32_v5 = vand.u32 2147483648, %v26_v2 }
  0x10   :  { %75 = vrsqrt.f32 %v40_v3  ;;  %v34_v8 = vmul.f32 %v26_v2, %v26_v2  ;;  %vm43_vm2 = vcmp.eq.f32.partialorder %v40_v3, inf  ;;  %v46_v9 = vand.u32 2147483648, %v40_v3 }
  0x11   :  { %vm45_vm3 = vcmp.eq.f32.partialorder %v40_v3, 0.0  ;;  %v48_v11 = vmul.f32 %v40_v3, %v40_v3 }
  0x1c   :  { %v74_v4 = vpop.eup %73 }
  0x1d   :  { %v76_v6 = vpop.eup %75  ;;  %v28_v7 = vmul.f32 %v74_v4, %v26_v2 }
  0x1e   :  { %v42_v10 = vmul.f32 %v76_v6, %v40_v3 }
  0x1f   :  { %v30_v12 = vsel %vm29_vm0, %v26_v2, %v28_v7 }
  0x20   :  { %v33_v13 = vsel %vm31_vm1, %v32_v5, %v30_v12  ;;  %v44_v14 = vsel %vm43_vm2, %v40_v3, %v42_v10 }
  0x21   :  { %v35_v15 = vmul.f32 %v34_v8, %v33_v13  ;;  %v47_v16 = vsel %vm45_vm3, %v46_v9, %v44_v14 }
  0x22   :  { %v49_v17 = vmul.f32 %v48_v11, %v47_v16 }
  0x24   :  { %v51_v18 = vadd.f32 %v49_v17, %v35_v15 }
  0x26   :  { %57 = vadd.xlane.f32.xlu0 %v51_v18 }
  0xaf   :  { %v58_v19 = vpop.xlane.xlu0 %57 }
  0xb0   :  { %v59_v20 = vmul.f32 0.00390625, %v58_v19 }
  0xb2   :  { %77 = vlog2.f32 %v59_v20 }
  0xbf   :  { %v78_v21 = vpop.eup %77 }
  0xc0   :  { %v61_v22 = vmul.f32 0.6931472, %v78_v21 }
  0xc2   :  { %v62_v23 = vmul.f32 0.4, %v61_v22 }
  0xc4   :  { %v63_v24 = vmul.f32 1.442695, %v62_v23 }
  0xc6   :  { %79 = vpow2.f32 %v63_v24 }
  0xd3   :  { %v80_v25 = vpop.eup %79 }
  0xd4   :  { %66 = vst.msk [vmem:[%s121_s1] sm:$0xff] %vm65_vm4, %v80_v25 }
  0xd5   :  { %71 = vsyncpa [#allocation4], 1 }

</bundles_post_ra>
